<compile_context>
chip_gen: v7x
topology: tpu7x:2x2x1
jax: 0.10.0
libtpu: 0.0.40
codegen_flags: <defaults>
</compile_context>

<pallas_src>
import functools

import jax
import jax.numpy as jnp
from jax import lax
from jax.experimental import pallas as pl
from jax.experimental.pallas import tpu as pltpu

LANES = 128


def _round_up(v, m):
    return (v + m - 1) // m * m


def _chip_config():
    """Returns (max_block_rows, num_tensorcores) for the current TPU."""
    try:
        kind = jax.devices()[0].device_kind.lower()
    except Exception:
        kind = ""
    if "v5 lite" in kind or "v5lite" in kind or "v5e" in kind:
        return 2048, 1            # 1 MiB blocks; 16 MiB scoped VMEM default
    if "v6 lite" in kind or "v6lite" in kind or "v6e" in kind:
        return 4096, 1            # 2 MiB blocks; single TensorCore
    if "v7" in kind:
        return 8192, 2            # 4 MiB blocks; 2 TensorCores per chip
    return 4096, 2                # conservative default (v4 / v5p megacore, ...)


def _mse_partial_kernel(x_ref, t_ref, out_ref, *, rows, block_rows,
                        steps_per_core, need_mask):
    c = pl.program_id(0)              # "parallel" axis (TensorCore split)
    j = pl.program_id(1)              # "arbitrary" reduction axis

    @pl.when(j == 0)
    def _init():
        out_ref[...] = jnp.zeros_like(out_ref)

    groups = block_rows // 8
    global_block = c * steps_per_core + j

    def contribution(mask_rows):
        d = x_ref[...].astype(jnp.float32) - t_ref[...].astype(jnp.float32)
        if mask_rows:
            # Mask BEFORE squaring: rows at/past the true extent come from a
            # partial-block DMA (undefined contents) or from a clamped
            # duplicate block; the select discards them no matter what garbage
            # (even NaN/Inf) they hold.
            row_ids = global_block * block_rows + lax.broadcasted_iota(
                jnp.int32, d.shape, 0)
            d = jnp.where(row_ids < rows, d, 0.0)
        sq = d * d
        # (block_rows,128) -> (1,g,8,128) splits the sublane axis in groups of
        # 8, aligning exactly with (8,128) vreg tiles (free reshape); the
        # axis-1 reduce is pure VPU adds into the resident (1,8,128) block.
        return jnp.sum(sq.reshape(1, groups, 8, LANES), axis=1)

    if need_mask:
        is_edge = (global_block + 1) * block_rows > rows

        @pl.when(jnp.logical_not(is_edge))
        def _full():
            out_ref[...] += contribution(False)

        @pl.when(is_edge)
        def _edge():
            out_ref[...] += contribution(True)
    else:
        out_ref[...] += contribution(False)


def _mse_sum_pallas(x2d, t2d, rows, max_rows, max_cores):
    """Sum of squared differences over a (rows, 128) f32/bf16 slab."""
    nb0 = pl.cdiv(rows, max_rows)               # blocks at the max block size
    num_cores = max_cores if nb0 >= 2 else 1
    steps = pl.cdiv(nb0, num_cores)
    total_steps = num_cores * steps
    # Spread rows (rounded to 8) evenly over all grid steps so the cores cover
    # the slab without duplicate-block reads; capped at the per-chip maximum.
    block_rows = min(max_rows, _round_up(pl.cdiv(rows, total_steps), 8))
    num_blocks = pl.cdiv(rows, block_rows)
    need_mask = (total_steps * block_rows) != rows

    def in_map(c, j):
        # Clamp so any residual extra trailing step re-reads the last valid
        # block (in-bounds DMA); its contribution is zeroed by the row mask.
        return (jnp.minimum(c * steps + j, num_blocks - 1), 0)

    kernel = functools.partial(
        _mse_partial_kernel, rows=rows, block_rows=block_rows,
        steps_per_core=steps, need_mask=need_mask)

    partials = pl.pallas_call(
        kernel,
        out_shape=jax.ShapeDtypeStruct((num_cores, 8, LANES), jnp.float32),
        grid_spec=pltpu.PrefetchScalarGridSpec(
            num_scalar_prefetch=0,
            grid=(num_cores, steps),
            in_specs=[
                pl.BlockSpec((block_rows, LANES), in_map),
                pl.BlockSpec((block_rows, LANES), in_map),
            ],
            out_specs=pl.BlockSpec((1, 8, LANES), lambda c, j: (c, 0, 0)),
        ),
        compiler_params=pltpu.CompilerParams(
            dimension_semantics=("parallel", "arbitrary")),
    )(x2d, t2d)

    return jnp.sum(partials)


@jax.jit
def content_loss_forward(x, target):
    """Returns (input_passthrough, mse_loss) matching ContentLoss.forward."""
    assert x.shape == target.shape, "input and target must have the same shape"
    n = x.size
    max_rows, max_cores = _chip_config()

    x_flat = x.reshape(-1)
    t_flat = target.reshape(-1)
    rows = n // LANES
    m = rows * LANES

    sq_sum = jnp.float32(0.0)
    if rows > 0:
        if m == n:
            x_main, t_main = x_flat, t_flat
        else:
            # Rare ragged case: the main slab is the largest 128-divisible
            # prefix (static slice); the remainder is handled below.
            x_main, t_main = x_flat[:m], t_flat[:m]
        x2d = x_main.reshape(rows, LANES)
        t2d = t_main.reshape(rows, LANES)
        sq_sum = sq_sum + _mse_sum_pallas(x2d, t2d, rows, max_rows, max_cores)
    if m != n:
        # < 128-element lane remainder: trivial wrapper-side tail sum (keeps
        # the kernel at 2N bytes of HBM traffic; no jnp.pad / full-array copy).
        dt = x_flat[m:].astype(jnp.float32) - t_flat[m:].astype(jnp.float32)
        sq_sum = sq_sum + jnp.sum(dt * dt)

    loss = sq_sum * (1.0 / float(n))
    # ContentLoss.forward returns the input unchanged (loss stashed separately).
    return x, loss


if __name__ == "__main__":
    key = jax.random.PRNGKey(0)
    k1, k2, k3, k4, k5, k6, k7, k8 = jax.random.split(key, 8)

    # 1) Small NCHW feature map consistent with a VGG content layer.
    x = jax.random.normal(k1, (2, 4, 16, 16), dtype=jnp.float32)
    t = jax.random.normal(k2, (2, 4, 16, 16), dtype=jnp.float32)
    out, loss = content_loss_forward(x, t)
    jax.block_until_ready((out, loss))
    ref = jnp.mean((x - t) ** 2)
    assert jnp.allclose(loss, ref, rtol=1e-5, atol=1e-6), (loss, ref)
    assert jnp.array_equal(out, x)

    # 2) 3939 rows of 128 (not a multiple of 8) -> exercises the masked ragged
    #    edge step on every chip generation.
    x2 = jax.random.normal(k3, (1, 3, 404, 416), dtype=jnp.float32)
    t2 = jax.random.normal(k4, (1, 3, 404, 416), dtype=jnp.float32)
    out2, loss2 = content_loss_forward(x2, t2)
    jax.block_until_ready((out2, loss2))
    ref2 = jnp.mean((x2 - t2) ** 2)
    assert jnp.allclose(loss2, ref2, rtol=1e-4, atol=1e-5), (loss2, ref2)
    assert jnp.array_equal(out2, x2)

    # 3) Element count not divisible by 128 -> wrapper-side lane-tail path.
    x3 = jax.random.normal(k5, (2, 3, 17, 23), dtype=jnp.float32)
    t3 = jax.random.normal(k6, (2, 3, 17, 23), dtype=jnp.float32)
    out3, loss3 = content_loss_forward(x3, t3)
    jax.block_until_ready((out3, loss3))
    ref3 = jnp.mean((x3 - t3) ** 2)
    assert jnp.allclose(loss3, ref3, rtol=1e-5, atol=1e-6), (loss3, ref3)

    # 4) 8320 rows -> multi-block sweep (and the 2-core partial-sum path on
    #    multi-TensorCore chips).
    x4 = jax.random.normal(k7, (2, 8, 256, 260), dtype=jnp.float32)
    t4 = jax.random.normal(k8, (2, 8, 256, 260), dtype=jnp.float32)
    out4, loss4 = content_loss_forward(x4, t4)
    jax.block_until_ready((out4, loss4))
    ref4 = jnp.mean((x4 - t4) ** 2)
    assert jnp.allclose(loss4, ref4, rtol=1e-4, atol=1e-5), (loss4, ref4)

    print("KERNEL_OK")
</pallas_src>

<mosaic_0001>
module attributes {stable_mosaic.version = 11 : i64} {
  func.func @_mse_partial_kernel(%arg0: i32, %arg1: i32, %arg2: memref<16x128xf32, #tpu.memory_space<vmem>>, %arg3: memref<16x128xf32, #tpu.memory_space<vmem>>, %arg4: memref<1x8x128xf32, #tpu.memory_space<vmem>>) attributes {dimension_semantics = [#tpu.dimension_semantics<parallel>, #tpu.dimension_semantics<arbitrary>], iteration_bounds = array<i64: 1, 1>, scalar_prefetch = 0 : i64, scratch_operands = 0 : i64, tpu.core_type = #tpu.core_type<tc>, window_params = [{transform_indices = @transform_0, window_bounds = array<i64: 16, 128>}, {transform_indices = @transform_1, window_bounds = array<i64: 16, 128>}, {transform_indices = @transform_2, window_bounds = array<i64: 1, 8, 128>}]} {
    %c0_i32 = arith.constant 0 : i32
    %0 = arith.cmpi eq, %arg1, %c0_i32 : i32
    %1 = arith.extui %0 : i1 to i32
    %c0_i32_0 = arith.constant 0 : i32
    %2 = arith.cmpi ne, %1, %c0_i32_0 : i32
    scf.if %2 {
      %cst_10 = arith.constant 0.000000e+00 : f32
      %12 = vector.broadcast %cst_10 : f32 to vector<1x8x128xf32>
      %c0_11 = arith.constant 0 : index
      %c0_12 = arith.constant 0 : index
      %c0_13 = arith.constant 0 : index
      %13 = vector.load %arg4[%c0_11, %c0_12, %c0_13] : memref<1x8x128xf32, #tpu.memory_space<vmem>>, vector<1x8x128xf32>
      tpu.vector_store %arg4[%c0_11, %c0_12, %c0_13], %12 {strides = array<i32>} : memref<1x8x128xf32, #tpu.memory_space<vmem>>, vector<1x8x128xf32>,
    } else {
    }
    %c0 = arith.constant 0 : index
    %c0_1 = arith.constant 0 : index
    %c0_2 = arith.constant 0 : index
    %3 = vector.load %arg4[%c0, %c0_1, %c0_2] : memref<1x8x128xf32, #tpu.memory_space<vmem>>, vector<1x8x128xf32>
    %c0_3 = arith.constant 0 : index
    %c0_4 = arith.constant 0 : index
    %4 = vector.load %arg2[%c0_3, %c0_4] : memref<16x128xf32, #tpu.memory_space<vmem>>, vector<16x128xf32>
    %c0_5 = arith.constant 0 : index
    %c0_6 = arith.constant 0 : index
    %5 = vector.load %arg3[%c0_5, %c0_6] : memref<16x128xf32, #tpu.memory_space<vmem>>, vector<16x128xf32>
    %6 = arith.subf %4, %5 : vector<16x128xf32>
    %7 = arith.mulf %6, %6 : vector<16x128xf32>
    %8 = vector.shape_cast %7 : vector<16x128xf32> to vector<1x2x8x128xf32>
    %cst = arith.constant dense<0.000000e+00> : vector<1x8x128xf32>
    %9 = vector.multi_reduction <add>, %8, %cst [1] : vector<1x2x8x128xf32> to vector<1x8x128xf32>
    %10 = arith.addf %3, %9 : vector<1x8x128xf32>
    %c0_7 = arith.constant 0 : index
    %c0_8 = arith.constant 0 : index
    %c0_9 = arith.constant 0 : index
    %11 = vector.load %arg4[%c0_7, %c0_8, %c0_9] : memref<1x8x128xf32, #tpu.memory_space<vmem>>, vector<1x8x128xf32>
    tpu.vector_store %arg4[%c0_7, %c0_8, %c0_9], %10 {strides = array<i32>} : memref<1x8x128xf32, #tpu.memory_space<vmem>>, vector<1x8x128xf32>,
    return
  }
  func.func @transform_0(%arg0: i32, %arg1: i32) -> (i32, i32) {
    %c1_i32 = arith.constant 1 : i32
    %0 = arith.muli %arg0, %c1_i32 : i32
    %1 = arith.addi %0, %arg1 : i32
    %c0_i32 = arith.constant 0 : i32
    %2 = arith.minsi %1, %c0_i32 : i32
    %c0_i32_0 = arith.constant 0 : i32
    %c0_i32_1 = arith.constant 0 : i32
    return %2, %c0_i32_0 : i32, i32
  }
  func.func @transform_1(%arg0: i32, %arg1: i32) -> (i32, i32) {
    %c1_i32 = arith.constant 1 : i32
    %0 = arith.muli %arg0, %c1_i32 : i32
    %1 = arith.addi %0, %arg1 : i32
    %c0_i32 = arith.constant 0 : i32
    %2 = arith.minsi %1, %c0_i32 : i32
    %c0_i32_0 = arith.constant 0 : i32
    %c0_i32_1 = arith.constant 0 : i32
    return %2, %c0_i32_0 : i32, i32
  }
  func.func @transform_2(%arg0: i32, %arg1: i32) -> (i32, i32, i32) {
    %c0_i32 = arith.constant 0 : i32
    %c0_i32_0 = arith.constant 0 : i32
    %c0_i32_1 = arith.constant 0 : i32
    return %arg0, %c0_i32, %c0_i32_0 : i32, i32, i32
  }
}

</mosaic_0001>

<bundles_post_ra>
// kernel: content_loss_forward.1
= control target key start
LH: loop header
LB: loop body
LE: loop exit
PB: predicated region body
PF: predicated region fallthrough
CT: control target
= control target key end

     0   :  { %s139_s0 = inlined_call_operand.vmem [shape: f32[16,128], index: 0, kind: input, shape index: {}]   ;;  %s140_s1 = inlined_call_operand.vmem [shape: f32[16,128], index: 1, kind: input, shape index: {}]   ;;  %s141_s2 = inlined_call_operand.vmem [shape: f32[1,8,128], index: 2, kind: output, shape index: {}]  }
   0x1   :  { %v81_v0 = vld [vmem:[%s139_s0] sm:$0xff]  ;;  %v82_v1 = vld [vmem:[%s139_s0 + $0x8] sm:$0xff] }
   0x2   :  { %v83_v2 = vld [vmem:[%s140_s1] sm:$0xff]  ;;  %v84_v3 = vld [vmem:[%s140_s1 + $0x8] sm:$0xff] }
   0x3   :  { %v85_v4 = vsub.f32 %v81_v0, %v83_v2  ;;  %v86_v5 = vsub.f32 %v82_v1, %v84_v3 }
   0x5   :  { %v87_v6 = vmul.f32 %v85_v4, %v85_v4  ;;  %v88_v7 = vmul.f32 %v86_v5, %v86_v5 }
   0x7   :  { %v89_v8 = vadd.f32 %v88_v7, %v87_v6 }
   0x9   :  { %91 = vst [vmem:[%s141_s2] sm:$0xff] %v89_v8 }

</bundles_post_ra>
